<compile_context>
chip_gen: v7x
topology: tpu7x:2x2x1
jax: 0.10.0
libtpu: 0.0.40
codegen_flags: <defaults>
</compile_context>

<pallas_src>
import functools

import jax
import jax.numpy as jnp
from jax.experimental import pallas as pl
from jax.experimental.pallas import tpu as pltpu

_LANE = 128  # TPU lane width: feature dims padded to multiples of this.


def _round_up(n, m):
    return (n + m - 1) // m * m


def _pad2(a, rows, cols):
    if a.shape == (rows, cols):
        return a
    return jnp.pad(a, ((0, rows - a.shape[0]), (0, cols - a.shape[1])))


def _num_tensorcores():
    """Best-effort TensorCore count of the local device (2 on v7x)."""
    try:
        return max(1, int(getattr(jax.devices()[0], "num_cores", 1)))
    except Exception:  # pragma: no cover - device query is best-effort only
        return 1


def _pick_batch_tile(B, n_cores):
    """Batch tile: small batches are not inflated; big batches use 256-row
    tiles (85%+ of HBM roofline per measured tiling data); keep grid >= n_cores
    for megacore when the batch is large enough."""
    tb = 256 if B > 256 else max(16, _round_up(B, 16))
    while n_cores > 1 and tb > 16 and _round_up(B, tb) // tb < n_cores:
        tb = max(16, _round_up(tb // 2, 16))
    return tb


def prepare_batch_net_params(w1, b1, w2, b2, w3, b3, *, weight_dtype=jnp.bfloat16):
    """One-time (init-time) padding to lane multiples + weight cast to bf16.

    Doing this outside the per-call jitted path avoids re-reading/re-writing
    every weight (f32 read + bf16 write) on every forward.
    Weights W_i: (fan_in, fan_out); biases b_i: (fan_out,) or (1, fan_out).
    """
    in_dim, h1 = w1.shape
    h2 = w2.shape[1]
    out_dim = w3.shape[1]
    Dip, H1p, H2p, Dop = (_round_up(d, _LANE) for d in (in_dim, h1, h2, out_dim))

    w1p = _pad2(w1, Dip, H1p).astype(weight_dtype)
    w2p = _pad2(w2, H1p, H2p).astype(weight_dtype)
    w3p = _pad2(w3, H2p, Dop).astype(weight_dtype)
    b1p = _pad2(b1.reshape(1, -1), 1, H1p).astype(jnp.float32)
    b2p = _pad2(b2.reshape(1, -1), 1, H2p).astype(jnp.float32)
    b3p = _pad2(b3.reshape(1, -1), 1, Dop).astype(jnp.float32)
    return (w1p, b1p, w2p, b2p, w3p, b3p)


def _mlp_kernel(x_ref, w1_ref, b1_ref, w2_ref, b2_ref, w3_ref, b3_ref, o_ref):
    # In-kernel bf16 cast of the activations (hides under the input DMA).
    x = x_ref[...].astype(jnp.bfloat16)
    # layer1: bf16 MXU matmul, f32 accumulation; bias + ReLU in f32 (v5e has
    # no bf16 VPU path, and it is exact on v6e/v7x too).
    h = jnp.dot(x, w1_ref[...], preferred_element_type=jnp.float32)
    h = jnp.maximum(h + b1_ref[...], 0.0)
    # layer2: Linear + ReLU
    h = jnp.dot(h.astype(jnp.bfloat16), w2_ref[...],
                preferred_element_type=jnp.float32)
    h = jnp.maximum(h + b2_ref[...], 0.0)
    # layer3: Linear (no activation) -- lane-dense (padded) output store.
    out = jnp.dot(h.astype(jnp.bfloat16), w3_ref[...],
                  preferred_element_type=jnp.float32) + b3_ref[...]
    o_ref[...] = out.astype(o_ref.dtype)


def _resident_spec(shape, single_buffer):
    """BlockSpec for a weight/bias that is resident across the whole grid.

    Constant block index -> the second pipeline buffer is never used, so ask
    for single buffering (saves resident VMEM; matters once weights grow,
    especially under v7x's 64 MiB VMEM)."""
    if single_buffer:
        return pl.BlockSpec(shape, lambda i: (0, 0), pipeline_mode=pl.Buffered(1))
    return pl.BlockSpec(shape, lambda i: (0, 0))


@functools.partial(
    jax.jit,
    static_argnames=("out_dim", "out_dtype", "trim_output", "single_buffer_weights"))
def _forward(x, params, *, out_dim, out_dtype, trim_output, single_buffer_weights):
    w1p, b1p, w2p, b2p, w3p, b3p = params
    B, in_dim = x.shape
    Dip, H1p = w1p.shape
    H2p = w2p.shape[1]
    Dop = w3p.shape[1]
    if in_dim > Dip:
        raise ValueError(f"x has in_dim={in_dim} > padded weight fan_in={Dip}")

    tb = _pick_batch_tile(B, _num_tensorcores())
    Bp = _round_up(B, tb)
    # Zero-padding keeps the math exact: padded K columns/rows contribute 0
    # (and ReLU(0) = 0); padded output lanes are trimmed below.
    if (Bp, Dip) != (B, in_dim):
        x = jnp.pad(x, ((0, Bp - B), (0, Dip - in_dim)))

    grid = (Bp // tb,)
    out_itemsize = jnp.dtype(out_dtype).itemsize

    # Cost estimate (advisory for XLA's scheduler around the custom call).
    flops = 2 * Bp * (Dip * H1p + H1p * H2p + H2p * Dop)
    bytes_accessed = (
        Bp * Dip * 4                                    # f32 activations in
        + 2 * (Dip * H1p + H1p * H2p + H2p * Dop)       # bf16 weights
        + 4 * (H1p + H2p + Dop)                         # f32 biases
        + Bp * Dop * out_itemsize)                      # output

    # VMEM scoped limit from the actual block footprint (+headroom), instead
    # of a blanket 48 MiB; capped well under v7x's 64 MiB physical VMEM.
    w_bufs = 1 if single_buffer_weights else 2
    block_bytes = (
        2 * tb * Dip * 4                                # x block, double-buffered
        + 2 * tb * Dop * out_itemsize                   # out block, double-buffered
        + w_bufs * 2 * (Dip * H1p + H1p * H2p + H2p * Dop)  # bf16 weights
        + w_bufs * 4 * (H1p + H2p + Dop)                # f32 biases
        + 4 * tb * (H1p + H2p))                         # f32 intermediates headroom
    vmem_limit = int(min(48 * 1024 * 1024, max(16 * 1024 * 1024, 2 * block_bytes)))

    out_padded = pl.pallas_call(
        _mlp_kernel,
        out_shape=jax.ShapeDtypeStruct((Bp, Dop), out_dtype),
        grid=grid,
        in_specs=[
            pl.BlockSpec((tb, Dip), lambda i: (i, 0)),          # x (batch-tiled, f32)
            _resident_spec((Dip, H1p), single_buffer_weights),  # W1
            _resident_spec((1, H1p), single_buffer_weights),    # b1
            _resident_spec((H1p, H2p), single_buffer_weights),  # W2
            _resident_spec((1, H2p), single_buffer_weights),    # b2
            _resident_spec((H2p, Dop), single_buffer_weights),  # W3
            _resident_spec((1, Dop), single_buffer_weights),    # b3
        ],
        out_specs=pl.BlockSpec((tb, Dop), lambda i: (i, 0)),
        compiler_params=pltpu.CompilerParams(
            dimension_semantics=("parallel",),
            vmem_limit_bytes=vmem_limit,
        ),
        cost_estimate=pl.CostEstimate(
            flops=flops, transcendentals=0, bytes_accessed=bytes_accessed),
    )(x, w1p, b1p, w2p, b2p, w3p, b3p)

    if trim_output and (Bp != B or Dop != out_dim):
        # Extra output copy; pass trim_output=False if the consumer can mask.
        out_padded = out_padded[:B, :out_dim]
    return out_padded


# Tri-state feature detection for pipeline_mode=pl.Buffered(1) on resident
# weights: None = unknown, True/False once the first compile decides.
_SINGLE_BUFFER_WEIGHTS_OK = None


def batch_net_forward(x, params, *, out_dim, out_dtype=jnp.float32,
                      trim_output=True):
    """Batch_Net forward. x: (B, in_dim) f32 -> (B, out_dim) `out_dtype`.

    `params` must come from prepare_batch_net_params (padded, bf16 weights).
    """
    global _SINGLE_BUFFER_WEIGHTS_OK
    if _SINGLE_BUFFER_WEIGHTS_OK is None:
        try:
            out = _forward(x, params, out_dim=out_dim, out_dtype=out_dtype,
                           trim_output=trim_output, single_buffer_weights=True)
            _SINGLE_BUFFER_WEIGHTS_OK = True
            return out
        except Exception:
            # This Pallas build rejected pipeline_mode=Buffered(1) on a
            # pallas_call operand; fall back to default double buffering.
            _SINGLE_BUFFER_WEIGHTS_OK = False
    return _forward(x, params, out_dim=out_dim, out_dtype=out_dtype,
                    trim_output=trim_output,
                    single_buffer_weights=bool(_SINGLE_BUFFER_WEIGHTS_OK))


def _init_linear(key, fan_in, fan_out):
    """Deterministic init mimicking nn.Linear's uniform(-1/sqrt(fan_in), +)."""
    kw, kb = jax.random.split(key)
    bound = 1.0 / jnp.sqrt(float(fan_in))
    # stored as (fan_in, fan_out) so the kernel does x @ W
    w = jax.random.uniform(kw, (fan_in, fan_out), jnp.float32, -bound, bound)
    b = jax.random.uniform(kb, (1, fan_out), jnp.float32, -bound, bound)
    return w, b


def _reference_bf16(x, w1, b1, w2, b2, w3, b3):
    """Pure-JAX reference with the same bf16-operand / f32-accumulate scheme."""
    def mm(a, w):
        return jnp.dot(a.astype(jnp.bfloat16), w.astype(jnp.bfloat16),
                       preferred_element_type=jnp.float32)
    h = jnp.maximum(mm(x, w1) + b1, 0.0)
    h = jnp.maximum(mm(h, w2) + b2, 0.0)
    return mm(h, w3) + b3


def _reference_f32(x, w1, b1, w2, b2, w3, b3):
    h = jnp.maximum(x @ w1 + b1, 0.0)
    h = jnp.maximum(h @ w2 + b2, 0.0)
    return h @ w3 + b3


if __name__ == "__main__":
    # Small shapes consistent with the MLP forward (in_dim -> h1 -> h2 -> out).
    batch, in_dim, n_hidden_1, n_hidden_2, out_dim = 32, 256, 128, 64, 32

    key = jax.random.PRNGKey(0)
    kx, k1, k2, k3 = jax.random.split(key, 4)

    x = jax.random.normal(kx, (batch, in_dim), jnp.float32)
    w1, b1 = _init_linear(k1, in_dim, n_hidden_1)
    w2, b2 = _init_linear(k2, n_hidden_1, n_hidden_2)
    w3, b3 = _init_linear(k3, n_hidden_2, out_dim)

    # One-time, off the per-call path: pad + cast weights into kernel layout.
    params = prepare_batch_net_params(w1, b1, w2, b2, w3, b3)
    params = jax.tree_util.tree_map(jax.block_until_ready, params)

    out = batch_net_forward(x, params, out_dim=out_dim)
    out = jax.block_until_ready(out)

    assert out.shape == (batch, out_dim), out.shape

    ref_bf16 = _reference_bf16(x, w1, b1, w2, b2, w3, b3)
    assert jnp.allclose(out, ref_bf16, atol=2e-3, rtol=2e-3), \
        "mismatch vs bf16-matched JAX reference"

    ref_f32 = _reference_f32(x, w1, b1, w2, b2, w3, b3)
    assert jnp.allclose(out, ref_f32, atol=1e-1, rtol=1e-1), \
        "mismatch vs f32 JAX reference beyond expected bf16 error"

    print("KERNEL_OK")
</pallas_src>

<mosaic_0001>
module attributes {stable_mosaic.version = 11 : i64} {
  func.func @_mlp_kernel(%arg0: i32, %arg1: memref<32x256xf32, #tpu.memory_space<vmem>>, %arg2: memref<256x128xbf16, #tpu.memory_space<vmem>>, %arg3: memref<1x128xf32, #tpu.memory_space<vmem>>, %arg4: memref<128x128xbf16, #tpu.memory_space<vmem>>, %arg5: memref<1x128xf32, #tpu.memory_space<vmem>>, %arg6: memref<128x128xbf16, #tpu.memory_space<vmem>>, %arg7: memref<1x128xf32, #tpu.memory_space<vmem>>, %arg8: memref<32x128xf32, #tpu.memory_space<vmem>>) attributes {dimension_semantics = [#tpu.dimension_semantics<parallel>], iteration_bounds = array<i64: 1>, scalar_prefetch = 0 : i64, scratch_operands = 0 : i64, tpu.core_type = #tpu.core_type<tc>, window_params = [{transform_indices = @transform_0, window_bounds = array<i64: 32, 256>}, {pipeline_mode = #tpu.pipeline_mode<synchronous>, transform_indices = @transform_1, window_bounds = array<i64: 256, 128>}, {pipeline_mode = #tpu.pipeline_mode<synchronous>, transform_indices = @transform_2, window_bounds = array<i64: 1, 128>}, {pipeline_mode = #tpu.pipeline_mode<synchronous>, transform_indices = @transform_3, window_bounds = array<i64: 128, 128>}, {pipeline_mode = #tpu.pipeline_mode<synchronous>, transform_indices = @transform_4, window_bounds = array<i64: 1, 128>}, {pipeline_mode = #tpu.pipeline_mode<synchronous>, transform_indices = @transform_5, window_bounds = array<i64: 128, 128>}, {pipeline_mode = #tpu.pipeline_mode<synchronous>, transform_indices = @transform_6, window_bounds = array<i64: 1, 128>}, {transform_indices = @transform_7, window_bounds = array<i64: 32, 128>}]} {
    %c0 = arith.constant 0 : index
    %c0_0 = arith.constant 0 : index
    %0 = vector.load %arg1[%c0, %c0_0] : memref<32x256xf32, #tpu.memory_space<vmem>>, vector<32x256xf32>
    %1 = arith.truncf %0 : vector<32x256xf32> to vector<32x256xbf16>
    %c0_1 = arith.constant 0 : index
    %c0_2 = arith.constant 0 : index
    %2 = vector.load %arg2[%c0_1, %c0_2] : memref<256x128xbf16, #tpu.memory_space<vmem>>, vector<256x128xbf16>
    %cst = arith.constant dense<0.000000e+00> : vector<32x128xf32>
    %3 = tpu.matmul %1, %2, %cst {dimension_numbers = #tpu.dot_dimension_numbers<[1], [0], [0], [1], [0, 0, 1, 1], [], []>} : vector<32x256xbf16>, vector<256x128xbf16>, vector<32x128xf32> -> vector<32x128xf32>
    %c0_3 = arith.constant 0 : index
    %c0_4 = arith.constant 0 : index
    %4 = vector.load %arg3[%c0_3, %c0_4] : memref<1x128xf32, #tpu.memory_space<vmem>>, vector<1x128xf32>
    %5 = vector.broadcast %4 : vector<1x128xf32> to vector<32x128xf32>
    %6 = arith.addf %3, %5 : vector<32x128xf32>
    %cst_5 = arith.constant 0.000000e+00 : f32
    %7 = vector.broadcast %cst_5 : f32 to vector<32x128xf32>
    %8 = arith.maximumf %6, %7 : vector<32x128xf32>
    %9 = arith.truncf %8 : vector<32x128xf32> to vector<32x128xbf16>
    %c0_6 = arith.constant 0 : index
    %c0_7 = arith.constant 0 : index
    %10 = vector.load %arg4[%c0_6, %c0_7] : memref<128x128xbf16, #tpu.memory_space<vmem>>, vector<128x128xbf16>
    %cst_8 = arith.constant dense<0.000000e+00> : vector<32x128xf32>
    %11 = tpu.matmul %9, %10, %cst_8 {dimension_numbers = #tpu.dot_dimension_numbers<[1], [0], [0], [1], [0, 0, 1, 1], [], []>} : vector<32x128xbf16>, vector<128x128xbf16>, vector<32x128xf32> -> vector<32x128xf32>
    %c0_9 = arith.constant 0 : index
    %c0_10 = arith.constant 0 : index
    %12 = vector.load %arg5[%c0_9, %c0_10] : memref<1x128xf32, #tpu.memory_space<vmem>>, vector<1x128xf32>
    %13 = vector.broadcast %12 : vector<1x128xf32> to vector<32x128xf32>
    %14 = arith.addf %11, %13 : vector<32x128xf32>
    %cst_11 = arith.constant 0.000000e+00 : f32
    %15 = vector.broadcast %cst_11 : f32 to vector<32x128xf32>
    %16 = arith.maximumf %14, %15 : vector<32x128xf32>
    %17 = arith.truncf %16 : vector<32x128xf32> to vector<32x128xbf16>
    %c0_12 = arith.constant 0 : index
    %c0_13 = arith.constant 0 : index
    %18 = vector.load %arg6[%c0_12, %c0_13] : memref<128x128xbf16, #tpu.memory_space<vmem>>, vector<128x128xbf16>
    %cst_14 = arith.constant dense<0.000000e+00> : vector<32x128xf32>
    %19 = tpu.matmul %17, %18, %cst_14 {dimension_numbers = #tpu.dot_dimension_numbers<[1], [0], [0], [1], [0, 0, 1, 1], [], []>} : vector<32x128xbf16>, vector<128x128xbf16>, vector<32x128xf32> -> vector<32x128xf32>
    %c0_15 = arith.constant 0 : index
    %c0_16 = arith.constant 0 : index
    %20 = vector.load %arg7[%c0_15, %c0_16] : memref<1x128xf32, #tpu.memory_space<vmem>>, vector<1x128xf32>
    %21 = vector.broadcast %20 : vector<1x128xf32> to vector<32x128xf32>
    %22 = arith.addf %19, %21 : vector<32x128xf32>
    %c0_17 = arith.constant 0 : index
    %c0_18 = arith.constant 0 : index
    %23 = vector.load %arg8[%c0_17, %c0_18] : memref<32x128xf32, #tpu.memory_space<vmem>>, vector<32x128xf32>
    tpu.vector_store %arg8[%c0_17, %c0_18], %22 {strides = array<i32>} : memref<32x128xf32, #tpu.memory_space<vmem>>, vector<32x128xf32>,
    return
  }
  func.func @transform_0(%arg0: i32) -> (i32, i32) {
    %c0_i32 = arith.constant 0 : i32
    %c0_i32_0 = arith.constant 0 : i32
    return %arg0, %c0_i32 : i32, i32
  }
  func.func @transform_1(%arg0: i32) -> (i32, i32) {
    %c0_i32 = arith.constant 0 : i32
    %c0_i32_0 = arith.constant 0 : i32
    %c0_i32_1 = arith.constant 0 : i32
    return %c0_i32, %c0_i32_0 : i32, i32
  }
  func.func @transform_2(%arg0: i32) -> (i32, i32) {
    %c0_i32 = arith.constant 0 : i32
    %c0_i32_0 = arith.constant 0 : i32
    %c0_i32_1 = arith.constant 0 : i32
    return %c0_i32, %c0_i32_0 : i32, i32
  }
  func.func @transform_3(%arg0: i32) -> (i32, i32) {
    %c0_i32 = arith.constant 0 : i32
    %c0_i32_0 = arith.constant 0 : i32
    %c0_i32_1 = arith.constant 0 : i32
    return %c0_i32, %c0_i32_0 : i32, i32
  }
  func.func @transform_4(%arg0: i32) -> (i32, i32) {
    %c0_i32 = arith.constant 0 : i32
    %c0_i32_0 = arith.constant 0 : i32
    %c0_i32_1 = arith.constant 0 : i32
    return %c0_i32, %c0_i32_0 : i32, i32
  }
  func.func @transform_5(%arg0: i32) -> (i32, i32) {
    %c0_i32 = arith.constant 0 : i32
    %c0_i32_0 = arith.constant 0 : i32
    %c0_i32_1 = arith.constant 0 : i32
    return %c0_i32, %c0_i32_0 : i32, i32
  }
  func.func @transform_6(%arg0: i32) -> (i32, i32) {
    %c0_i32 = arith.constant 0 : i32
    %c0_i32_0 = arith.constant 0 : i32
    %c0_i32_1 = arith.constant 0 : i32
    return %c0_i32, %c0_i32_0 : i32, i32
  }
  func.func @transform_7(%arg0: i32) -> (i32, i32) {
    %c0_i32 = arith.constant 0 : i32
    %c0_i32_0 = arith.constant 0 : i32
    return %arg0, %c0_i32 : i32, i32
  }
}

module attributes {stable_mosaic.version = 11 : i64} {
  func.func @_mlp_kernel(%arg0: i32, %arg1: memref<32x256xf32, #tpu.memory_space<vmem>>, %arg2: memref<256x128xbf16, #tpu.memory_space<vmem>>, %arg3: memref<1x128xf32, #tpu.memory_space<vmem>>, %arg4: memref<128x128xbf16, #tpu.memory_space<vmem>>, %arg5: memref<1x128xf32, #tpu.memory_space<vmem>>, %arg6: memref<128x128xbf16, #tpu.memory_space<vmem>>, %arg7: memref<1x128xf32, #tpu.memory_space<vmem>>, %arg8: memref<32x128xf32, #tpu.memory_space<vmem>>) attributes {dimension_semantics = [#tpu.dimension_semantics<parallel>], iteration_bounds = array<i64: 1>, scalar_prefetch = 0 : i64, scratch_operands = 0 : i64, tpu.core_type = #tpu.core_type<tc>, window_params = [{transform_indices = @transform_0, window_bounds = array<i64: 32, 256>}, {pipeline_mode = #tpu.pipeline_mode<synchronous>, transform_indices = @transform_1, window_bounds = array<i64: 256, 128>}, {pipeline_mode = #tpu.pipeline_mode<synchronous>, transform_indices = @transform_2, window_bounds = array<i64: 1, 128>}, {pipeline_mode = #tpu.pipeline_mode<synchronous>, transform_indices = @transform_3, window_bounds = array<i64: 128, 128>}, {pipeline_mode = #tpu.pipeline_mode<synchronous>, transform_indices = @transform_4, window_bounds = array<i64: 1, 128>}, {pipeline_mode = #tpu.pipeline_mode<synchronous>, transform_indices = @transform_5, window_bounds = array<i64: 128, 128>}, {pipeline_mode = #tpu.pipeline_mode<synchronous>, transform_indices = @transform_6, window_bounds = array<i64: 1, 128>}, {transform_indices = @transform_7, window_bounds = array<i64: 32, 128>}]} {
    %c0 = arith.constant 0 : index
    %c0_0 = arith.constant 0 : index
    %0 = vector.load %arg1[%c0, %c0_0] : memref<32x256xf32, #tpu.memory_space<vmem>>, vector<32x256xf32>
    %1 = arith.truncf %0 : vector<32x256xf32> to vector<32x256xbf16>
    %c0_1 = arith.constant 0 : index
    %c0_2 = arith.constant 0 : index
    %2 = vector.load %arg2[%c0_1, %c0_2] : memref<256x128xbf16, #tpu.memory_space<vmem>>, vector<256x128xbf16>
    %cst = arith.constant dense<0.000000e+00> : vector<32x128xf32>
    %3 = tpu.matmul %1, %2, %cst {dimension_numbers = #tpu.dot_dimension_numbers<[1], [0], [0], [1], [0, 0, 1, 1], [], []>} : vector<32x256xbf16>, vector<256x128xbf16>, vector<32x128xf32> -> vector<32x128xf32>
    %c0_3 = arith.constant 0 : index
    %c0_4 = arith.constant 0 : index
    %4 = vector.load %arg3[%c0_3, %c0_4] : memref<1x128xf32, #tpu.memory_space<vmem>>, vector<1x128xf32>
    %5 = vector.broadcast %4 : vector<1x128xf32> to vector<32x128xf32>
    %6 = arith.addf %3, %5 : vector<32x128xf32>
    %cst_5 = arith.constant 0.000000e+00 : f32
    %7 = vector.broadcast %cst_5 : f32 to vector<32x128xf32>
    %8 = arith.maximumf %6, %7 : vector<32x128xf32>
    %9 = arith.truncf %8 : vector<32x128xf32> to vector<32x128xbf16>
    %c0_6 = arith.constant 0 : index
    %c0_7 = arith.constant 0 : index
    %10 = vector.load %arg4[%c0_6, %c0_7] : memref<128x128xbf16, #tpu.memory_space<vmem>>, vector<128x128xbf16>
    %cst_8 = arith.constant dense<0.000000e+00> : vector<32x128xf32>
    %11 = tpu.matmul %9, %10, %cst_8 {dimension_numbers = #tpu.dot_dimension_numbers<[1], [0], [0], [1], [0, 0, 1, 1], [], []>} : vector<32x128xbf16>, vector<128x128xbf16>, vector<32x128xf32> -> vector<32x128xf32>
    %c0_9 = arith.constant 0 : index
    %c0_10 = arith.constant 0 : index
    %12 = vector.load %arg5[%c0_9, %c0_10] : memref<1x128xf32, #tpu.memory_space<vmem>>, vector<1x128xf32>
    %13 = vector.broadcast %12 : vector<1x128xf32> to vector<32x128xf32>
    %14 = arith.addf %11, %13 : vector<32x128xf32>
    %cst_11 = arith.constant 0.000000e+00 : f32
    %15 = vector.broadcast %cst_11 : f32 to vector<32x128xf32>
    %16 = arith.maximumf %14, %15 : vector<32x128xf32>
    %17 = arith.truncf %16 : vector<32x128xf32> to vector<32x128xbf16>
    %c0_12 = arith.constant 0 : index
    %c0_13 = arith.constant 0 : index
    %18 = vector.load %arg6[%c0_12, %c0_13] : memref<128x128xbf16, #tpu.memory_space<vmem>>, vector<128x128xbf16>
    %cst_14 = arith.constant dense<0.000000e+00> : vector<32x128xf32>
    %19 = tpu.matmul %17, %18, %cst_14 {dimension_numbers = #tpu.dot_dimension_numbers<[1], [0], [0], [1], [0, 0, 1, 1], [], []>} : vector<32x128xbf16>, vector<128x128xbf16>, vector<32x128xf32> -> vector<32x128xf32>
    %c0_15 = arith.constant 0 : index
    %c0_16 = arith.constant 0 : index
    %20 = vector.load %arg7[%c0_15, %c0_16] : memref<1x128xf32, #tpu.memory_space<vmem>>, vector<1x128xf32>
    %21 = vector.broadcast %20 : vector<1x128xf32> to vector<32x128xf32>
    %22 = arith.addf %19, %21 : vector<32x128xf32>
    %c0_17 = arith.constant 0 : index
    %c0_18 = arith.constant 0 : index
    %23 = vector.load %arg8[%c0_17, %c0_18] : memref<32x128xf32, #tpu.memory_space<vmem>>, vector<32x128xf32>
    tpu.vector_store %arg8[%c0_17, %c0_18], %22 {strides = array<i32>} : memref<32x128xf32, #tpu.memory_space<vmem>>, vector<32x128xf32>,
    return
  }
  func.func @transform_0(%arg0: i32) -> (i32, i32) {
    %c0_i32 = arith.constant 0 : i32
    %c0_i32_0 = arith.constant 0 : i32
    return %arg0, %c0_i32 : i32, i32
  }
  func.func @transform_1(%arg0: i32) -> (i32, i32) {
    %c0_i32 = arith.constant 0 : i32
    %c0_i32_0 = arith.constant 0 : i32
    %c0_i32_1 = arith.constant 0 : i32
    return %c0_i32, %c0_i32_0 : i32, i32
  }
  func.func @transform_2(%arg0: i32) -> (i32, i32) {
    %c0_i32 = arith.constant 0 : i32
    %c0_i32_0 = arith.constant 0 : i32
    %c0_i32_1 = arith.constant 0 : i32
    return %c0_i32, %c0_i32_0 : i32, i32
  }
  func.func @transform_3(%arg0: i32) -> (i32, i32) {
    %c0_i32 = arith.constant 0 : i32
    %c0_i32_0 = arith.constant 0 : i32
    %c0_i32_1 = arith.constant 0 : i32
    return %c0_i32, %c0_i32_0 : i32, i32
  }
  func.func @transform_4(%arg0: i32) -> (i32, i32) {
    %c0_i32 = arith.constant 0 : i32
    %c0_i32_0 = arith.constant 0 : i32
    %c0_i32_1 = arith.constant 0 : i32
    return %c0_i32, %c0_i32_0 : i32, i32
  }
  func.func @transform_5(%arg0: i32) -> (i32, i32) {
    %c0_i32 = arith.constant 0 : i32
    %c0_i32_0 = arith.constant 0 : i32
    %c0_i32_1 = arith.constant 0 : i32
    return %c0_i32, %c0_i32_0 : i32, i32
  }
  func.func @transform_6(%arg0: i32) -> (i32, i32) {
    %c0_i32 = arith.constant 0 : i32
    %c0_i32_0 = arith.constant 0 : i32
    %c0_i32_1 = arith.constant 0 : i32
    return %c0_i32, %c0_i32_0 : i32, i32
  }
  func.func @transform_7(%arg0: i32) -> (i32, i32) {
    %c0_i32 = arith.constant 0 : i32
    %c0_i32_0 = arith.constant 0 : i32
    return %arg0, %c0_i32 : i32, i32
  }
}

</mosaic_0001>

<bundles_post_ra>
// kernel: _forward.1
= control target key start
LH: loop header
LB: loop body
LE: loop exit
PB: predicated region body
PF: predicated region fallthrough
CT: control target
= control target key end

     0   :  { %12 = vsyncpa [#allocation3], 0  ;;  %s974_s0 = inlined_call_operand.hbm [shape: f32[32,256], index: 0, kind: input, shape index: {}]   ;;  %s975_s1 = inlined_call_operand.hbm [shape: bf16[256,128], index: 1, kind: input, shape index: {}]   ;;  %s976_s2 = inlined_call_operand.vmem [shape: f32[1,128], index: 2, kind: input, shape index: {}]   ;;  %s977_s3 = inlined_call_operand.hbm [shape: bf16[128,128], index: 3, kind: input, shape index: {}]   ;;  %s978_s4 = inlined_call_operand.vmem [shape: f32[1,128], index: 4, kind: input, shape index: {}]   ;;  %s979_s5 = inlined_call_operand.hbm [shape: bf16[128,128], index: 5, kind: input, shape index: {}]   ;;  %s980_s6 = inlined_call_operand.vmem [shape: f32[1,128], index: 6, kind: input, shape index: {}]   ;;  %s981_s7 = inlined_call_operand.hbm [shape: f32[32,128], index: 7, kind: output, shape index: {}]  }
   0x1   :  { %13 = vsyncpa [#allocation6], 0 }
   0x2   :  { %14 = vsyncpa [#allocation9], 0 }
   0x3   :  { %15 = vsyncpa [#allocation4], 0  ;;  %s838_s24 = smov [#allocation5]   ;;  %s720_s28 = scalar_lea.hbm %s975_s1, 2048 }
   0x4   :  { %s33_s25 = sshll.u32 %s838_s24, 4  ;;  %p721_p0 = scmp.ne.s32.totalorder %s975_s1, %s720_s28  ;;  %s34_s25 = int_to_ptr.vmem [resolvable:$true] %s33_s25 }
   0x5   :  { %p724_p1 = scmp.lt.u32.totalorder %s720_s28, %s975_s1 }
   0x7   :  { %p726_p2 = pnand %p724_p1, %p721_p0 }
   0x9   :  { %729 = shalt.err (!%p726_p2)
}
   0xa   :  { %s730_s10 = scalar_lea.vmem %s34_s25, 2048  ;;  %p735_p4 = scmp.lt.s32.totalorder %s34_s25, %s34_s25 }
   0xb   :  { %p731_p3 = scmp.ne.s32.totalorder %s34_s25, %s730_s10  ;;  %p736_p5 = scmp.lt.s32.totalorder %s730_s10, %s730_s10 }
   0xd   :  { %p737_p6 = por %p736_p5, %p735_p4 }
   0xf   :  { %p738_p7 = pnand %p737_p6, %p731_p3 }
  0x11   :  { %741 = shalt.err (!%p738_p7)
}
  0x12   :  { %s839_s11 = smov 64   ;;  %s840_s12 = smov 4  }
  0x13   :  { %39 = dma.hbm_to_vmem [thread:$0]  %s975_s1, 2048, %s34_s25, [#allocation6], %s839_s11, %s839_s11, %s840_s12  }
  0x14   :  { %s841_s15 = smov [#allocation2]   ;;  %s742_s19 = scalar_lea.hbm %s974_s0, 1024 }
  0x15   :  { %s21_s16 = sshll.u32 %s841_s15, 4  ;;  %p743_p8 = scmp.ne.s32.totalorder %s974_s0, %s742_s19  ;;  %s22_s16 = int_to_ptr.vmem [resolvable:$true] %s21_s16 }
  0x16   :  { %p746_p9 = scmp.lt.u32.totalorder %s742_s19, %s974_s0 }
  0x18   :  { %p748_p10 = pnand %p746_p9, %p743_p8 }
  0x1a   :  { %751 = shalt.err (!%p748_p10)
}
  0x1b   :  { %s752_s24 = scalar_lea.vmem %s22_s16, 1024  ;;  %p757_p12 = scmp.lt.s32.totalorder %s22_s16, %s22_s16 }
  0x1c   :  { %p753_p11 = scmp.ne.s32.totalorder %s22_s16, %s752_s24  ;;  %p758_p13 = scmp.lt.s32.totalorder %s752_s24, %s752_s24 }
  0x1e   :  { %p759_p0 = por %p758_p13, %p757_p12 }
  0x20   :  { %p760_p1 = pnand %p759_p0, %p753_p11 }
  0x22   :  { %763 = shalt.err (!%p760_p1)
}
  0x23   :  { %s842_s1 = smov 256   ;;  %s843_s25 = smov 16  }
  0x24   :  { %27 = dma.hbm_to_vmem [thread:$0]  %s974_s0, 1024, %s22_s16, [#allocation3], %s842_s1, %s842_s1, %s843_s25  }
  0x25   :  { %s844_s28 = smov [#allocation7]   ;;  %s845_s30 = smov [#allocation8]  }
  0x26   :  { %s47_s29 = sshll.u32 %s844_s28, 4  ;;  %s61_s8 = sshll.u32 %s845_s30, 4  ;;  %s48_s29 = int_to_ptr.vmem [resolvable:$true] %s47_s29  ;;  %s916_s8 = int_to_ptr.vmem [resolvable:$true] %s61_s8 }
  0x27   :  { %s764_s13 = scalar_lea.hbm %s977_s3, 1024 }
  0x28   :  { %p765_p2 = scmp.ne.s32.totalorder %s977_s3, %s764_s13  ;;  %p768_p3 = scmp.lt.u32.totalorder %s764_s13, %s977_s3 }
  0x2a   :  { %p770_p4 = pnand %p768_p3, %p765_p2 }
  0x2c   :  { %773 = shalt.err (!%p770_p4)
}
  0x2d   :  { %s774_s0 = scalar_lea.vmem %s48_s29, 1024  ;;  %p779_p6 = scmp.lt.s32.totalorder %s48_s29, %s48_s29 }
  0x2e   :  { %p775_p5 = scmp.ne.s32.totalorder %s48_s29, %s774_s0  ;;  %p780_p7 = scmp.lt.s32.totalorder %s774_s0, %s774_s0 }
  0x30   :  { %p781_p8 = por %p780_p7, %p779_p6 }
  0x32   :  { %p782_p9 = pnand %p781_p8, %p775_p5 }
  0x34   :  { %785 = shalt.err (!%p782_p9)
}
  0x35   :  { %53 = dma.hbm_to_vmem [thread:$0]  %s977_s3, 1024, %s48_s29, [#allocation6], %s839_s11, %s839_s11, %s840_s12  }
  0x36   :  { %s786_s22 = scalar_lea.hbm %s979_s5, 1024 }
  0x37   :  { %p787_p10 = scmp.ne.s32.totalorder %s979_s5, %s786_s22  ;;  %p790_p11 = scmp.lt.u32.totalorder %s786_s22, %s979_s5 }
  0x39   :  { %p792_p12 = pnand %p790_p11, %p787_p10 }
  0x3b   :  { %795 = shalt.err (!%p792_p12)
}
  0x3c   :  { %s796_s26 = scalar_lea.vmem %s916_s8, 1024  ;;  %p801_p0 = scmp.lt.s32.totalorder %s916_s8, %s916_s8 }
  0x3d   :  { %p797_p13 = scmp.ne.s32.totalorder %s916_s8, %s796_s26  ;;  %p802_p1 = scmp.lt.s32.totalorder %s796_s26, %s796_s26 }
  0x3f   :  { %p803_p2 = por %p802_p1, %p801_p0 }
  0x41   :  { %p804_p3 = pnand %p803_p2, %p797_p13 }
  0x43   :  { %807 = shalt.err (!%p804_p3)
}
  0x44   :  { %67 = dma.hbm_to_vmem [thread:$0]  %s979_s5, 1024, %s916_s8, [#allocation9], %s839_s11, %s839_s11, %s840_s12  }
  0x45   :  { %830 = dma.done.wait [#allocation3], 1024  }
  0x46   :  { %831 = vsyncadd [#allocation3], 4294966272 }
  0x47   :  { %832 = dma.done.wait [#allocation6], 3072  }
  0x48   :  { %833 = vsyncadd [#allocation6], 4294964224 }
  0x49   :  { %834 = dma.done.wait [#allocation9], 1024  }
  0x4a   :  { %835 = vsyncadd [#allocation9], 4294966272  ;;  %v688_v0 = vld [vmem:[#allocation5 + $0x40] sm:$0xff]   ;;  %v690_v2 = vld [vmem:[#allocation5 + $0x48] sm:$0xff]  }
  0x4b   :  { %v689_v1 = vld [vmem:[#allocation5] sm:$0xff]   ;;  %589 = vmatprep.subr.bf16.mxu0 %v688_v0  ;;  %v691_v3 = vld [vmem:[#allocation5 + $0x8] sm:$0xff]   ;;  %v692_v4 = vld [vmem:[#allocation5 + $0x50] sm:$0xff]  }
  0x4c   :  { %590 = vmatpush3.bf16.msra.mxu0 %v689_v1  ;;  %v693_v5 = vld [vmem:[#allocation5 + $0x10] sm:$0xff]   ;;  %v694_v6 = vld [vmem:[#allocation5 + $0x58] sm:$0xff]   ;;  %v696_v8 = vld [vmem:[#allocation5 + $0x60] sm:$0xff]  }
  0x4d   :  { %591 = vmatprep.subr.bf16.mxu0 %v690_v2  ;;  %v695_v7 = vld [vmem:[#allocation5 + $0x18] sm:$0xff]   ;;  %v697_v9 = vld [vmem:[#allocation5 + $0x20] sm:$0xff]   ;;  %v698_v10 = vld [vmem:[#allocation5 + $0x68] sm:$0xff]  }
  0x4e   :  { %v84_v11 = vld [vmem:[#allocation2 + $0x8] sm:$0xff]  ;;  %v86_v12 = vld [vmem:[#allocation2 + $0x18] sm:$0xff]  ;;  %v700_v15 = vld [vmem:[#allocation5 + $0x70] sm:$0xff]  }
  0x4f   :  { %v92_v13 = vpack.c.bf16 %v86_v12, %v84_v11  ;;  %v699_v14 = vld [vmem:[#allocation5 + $0x28] sm:$0xff]   ;;  %v704_v16 = vld [vmem:[#allocation7] sm:$0xff]   ;;  %v701_v18 = vld [vmem:[#allocation5 + $0x30] sm:$0xff]  }
  0x50   :  { %592 = vmatpush3.bf16.msra.mxu0 %v691_v3  ;;  %v705_v17 = vld [vmem:[#allocation7 + $0x8] sm:$0xff]   ;;  %637 = vmatprep.subr.bf16.mxu1 %v704_v16  ;;  %v706_v19 = vld [vmem:[#allocation7 + $0x10] sm:$0xff]   ;;  %v702_v20 = vld [vmem:[#allocation5 + $0x78] sm:$0xff]  }
  0x51   :  { %593 = vmatprep.subr.bf16.mxu0 %v692_v4  ;;  %262 = vmatprep.mubr.bf16.mxu0 %v92_v13  ;;  %v703_v21 = vld [vmem:[#allocation5 + $0x38] sm:$0xff]   ;;  %v83_v22 = vld [vmem:[#allocation2] sm:$0xff]  ;;  %v85_v23 = vld [vmem:[#allocation2 + $0x10] sm:$0xff] }
  0x52   :  { %638 = vmatpush3.bf16.msra.mxu1 %v704_v16  ;;  %v88_v24 = vld [vmem:[#allocation2 + $0x28] sm:$0xff]  ;;  %v90_v25 = vld [vmem:[#allocation2 + $0x38] sm:$0xff]  ;;  %v91_v26 = vpack.c.bf16 %v85_v23, %v83_v22  ;;  %v87_v28 = vld [vmem:[#allocation2 + $0x20] sm:$0xff] }
  0x53   :  { %639 = vmatprep.subr.bf16.mxu1 %v705_v17  ;;  %v94_v27 = vpack.c.bf16 %v90_v25, %v88_v24  ;;  %v89_v29 = vld [vmem:[#allocation2 + $0x30] sm:$0xff]  ;;  %v707_v31 = vld [vmem:[#allocation7 + $0x18] sm:$0xff]   ;;  %v708_v32 = vld [vmem:[#allocation7 + $0x20] sm:$0xff]  }
  0x54   :  { %594 = vmatpush3.bf16.msra.mxu0 %v693_v5  ;;  %v93_v30 = vpack.c.bf16 %v89_v29, %v87_v28  ;;  %v709_v33 = vld [vmem:[#allocation7 + $0x28] sm:$0xff]   ;;  %v710_v34 = vld [vmem:[#allocation7 + $0x30] sm:$0xff]   ;;  %v711_v35 = vld [vmem:[#allocation7 + $0x38] sm:$0xff]  }
  0x55   :  { %595 = vmatprep.subr.bf16.mxu0 %v694_v6  ;;  %v712_v36 = vld [vmem:[#allocation8] sm:$0xff]   ;;  %v713_v37 = vld [vmem:[#allocation8 + $0x8] sm:$0xff]   ;;  %v714_v38 = vld [vmem:[#allocation8 + $0x10] sm:$0xff]  }
  0x56   :  { %640 = vmatpush3.bf16.msra.mxu1 %v705_v17  ;;  %v715_v39 = vld [vmem:[#allocation8 + $0x18] sm:$0xff]   ;;  %v716_v40 = vld [vmem:[#allocation8 + $0x20] sm:$0xff]   ;;  %v717_v41 = vld [vmem:[#allocation8 + $0x28] sm:$0xff]  }
  0x57   :  { %641 = vmatprep.subr.bf16.mxu1 %v706_v19  ;;  %v554_v44 = vld [vmem:[%s976_s2] ss:$0 sm:$0xff]  ;;  %v718_v1 = vld [vmem:[#allocation8 + $0x30] sm:$0xff]   ;;  %v719_v2 = vld [vmem:[#allocation8 + $0x38] sm:$0xff]  }
  0x58   :  { %596 = vmatpush3.bf16.msra.mxu0 %v695_v7  ;;  %v571_v3 = vld [vmem:[%s978_s4] ss:$0 sm:$0xff]  ;;  %s846_s4 = smov [#allocation10]  }
  0x59   :  { %597 = vmatprep.subr.bf16.mxu0 %v696_v8  ;;  %s540_s30 = sshll.u32 %s846_s4, 4  ;;  %s541_s30 = int_to_ptr.vmem [resolvable:$true] %s540_s30 }
  0x5a   :  { %642 = vmatpush3.bf16.msra.mxu1 %v706_v19  ;;  %s808_s8 = scalar_lea.vmem %s541_s30, 512  ;;  %p813_p5 = scmp.lt.s32.totalorder %s541_s30, %s541_s30 }
  0x5b   :  { %643 = vmatprep.subr.bf16.mxu1 %v707_v31  ;;  %p809_p4 = scmp.ne.s32.totalorder %s541_s30, %s808_s8  ;;  %p814_p6 = scmp.lt.s32.totalorder %s808_s8, %s808_s8 }
  0x5c   :  { %598 = vmatpush3.bf16.msra.mxu0 %v697_v9 }
  0x5d   :  { %599 = vmatprep.subr.bf16.mxu0 %v698_v10  ;;  %p815_p7 = por %p814_p6, %p813_p5 }
  0x5e   :  { %644 = vmatpush3.bf16.msra.mxu1 %v707_v31 }
  0x5f   :  { %645 = vmatprep.subr.bf16.mxu1 %v708_v32  ;;  %p816_p8 = pnand %p815_p7, %p809_p4 }
  0x60   :  { %600 = vmatpush3.bf16.msra.mxu0 %v699_v14 }
  0x61   :  { %601 = vmatprep.subr.bf16.mxu0 %v700_v15 }
  0x62   :  { %646 = vmatpush3.bf16.msra.mxu1 %v708_v32 }
  0x63   :  { %647 = vmatprep.subr.bf16.mxu1 %v709_v33 }
  0x64   :  { %602 = vmatpush3.bf16.msra.mxu0 %v701_v18  ;;  %v580_v18 = vld [vmem:[%s980_s6] ss:$0 sm:$0xff] }
  0x65   :  { %603 = vmatprep.subr.bf16.mxu0 %v702_v20 }
  0x66   :  { %648 = vmatpush3.bf16.msra.mxu1 %v709_v33 }
  0x67   :  { %649 = vmatprep.subr.bf16.mxu1 %v710_v34 }
  0x68   :  { %604 = vmatpush3.bf16.msra.mxu0 %v703_v21 }
  0x69   :  { %657 = vmatprep.subr.bf16.mxu0 %v712_v36 }
  0x6a   :  { %650 = vmatpush3.bf16.msra.mxu1 %v710_v34 }
  0x6b   :  { %263 = vmatmul.mubr.bf16.vlgmr.msra.gmra.mrb[0].mxu0 %v91_v26  ;;  %651 = vmatprep.subr.bf16.mxu1 %v711_v35 }
  0x6c   :  { %270 = vmatprep.mubr.bf16.mxu0 %v94_v27  ;;  %658 = vmatpush3.bf16.msra.mxu0 %v712_v36 }
  0x6d   :  { %659 = vmatprep.subr.bf16.mxu0 %v713_v37 }
  0x6e   :  { %652 = vmatpush3.bf16.msra.mxu1 %v711_v35 }
  0x70   :  { %660 = vmatpush3.bf16.msra.mxu0 %v713_v37 }
  0x71   :  { %661 = vmatprep.subr.bf16.mxu0 %v714_v38 }
  0x73   :  { %271 = vmatmul.mubr.bf16.gmra.mrb[4].mxu0 %v93_v30 }
  0x74   :  { %662 = vmatpush3.bf16.msra.mxu0 %v714_v38 }
  0x75   :  { %663 = vmatprep.subr.bf16.mxu0 %v715_v39 }
  0x78   :  { %664 = vmatpush3.bf16.msra.mxu0 %v715_v39 }
  0x79   :  { %665 = vmatprep.subr.bf16.mxu0 %v716_v40 }
  0x7c   :  { %666 = vmatpush3.bf16.msra.mxu0 %v716_v40 }
  0x7d   :  { %667 = vmatprep.subr.bf16.mxu0 %v717_v41 }
  0x80   :  { %668 = vmatpush3.bf16.msra.mxu0 %v717_v41 }
  0x81   :  { %669 = vmatprep.subr.bf16.mxu0 %v718_v1 }
  0x84   :  { %670 = vmatpush3.bf16.msra.mxu0 %v718_v1 }
  0x85   :  { %671 = vmatprep.subr.bf16.mxu0 %v719_v2 }
  0x88   :  { %672 = vmatpush3.bf16.msra.mxu0 %v719_v2 }
 0x13e   :  { %v605_v42 = vpop.f32.mrb[0].mxu0 }
 0x13f   :  { %v606_v43 = vpop.f32.mrb[1].mxu0 }
 0x140   :  { %v607_v45 = vadd.f32 %v606_v43, %v605_v42  ;;  %v608_v46 = vpop.f32.mrb[2].mxu0 }
 0x141   :  { %v609_v47 = vpop.f32.mrb[3].mxu0 }
 0x142   :  { %v610_v48 = vadd.f32 %v609_v47, %v608_v46  ;;  %v265_v49 = vadd.f32 %v607_v45, %v554_v44 }
 0x144   :  { %v268_v50 = vadd.f32 %v610_v48, %v554_v44  ;;  %v279_v52 = vmax.f32 %v265_v49, 0.0 }
 0x146   :  { %v611_v51 = vpop.f32.mrb[4].mxu0  ;;  %v280_v53 = vmax.f32 %v268_v50, 0.0 }
 0x147   :  { %v612_v54 = vpop.f32.mrb[5].mxu0 }
 0x148   :  { %v613_v55 = vadd.f32 %v612_v54, %v611_v51  ;;  %v614_v56 = vpop.f32.mrb[6].mxu0  ;;  %v283_v57 = vpack.c.bf16 %v280_v53, %v279_v52 }
 0x149   :  { %v615_v58 = vpop.f32.mrb[7].mxu0 }
 0x14a   :  { %v273_v59 = vadd.f32 %v613_v55, %v554_v44  ;;  %v616_v60 = vadd.f32 %v615_v58, %v614_v56  ;;  %653 = vmatprep.mubr.bf16.mxu1 %v283_v57 }
 0x14c   :  { %v276_v61 = vadd.f32 %v616_v60, %v554_v44  ;;  %v281_v62 = vmax.f32 %v273_v59, 0.0 }
 0x14e   :  { %v282_v63 = vmax.f32 %v276_v61, 0.0 }
 0x150   :  { %v284_v0 = vpack.c.bf16 %v282_v63, %v281_v62 }
 0x152   :  { %654 = vmatmul.mubr.bf16.vlgmr.msra.gmra.mrb[0].mxu1 %v284_v0 }
 0x225   :  { %v655_v4 = vpop.f32.mrb[0].mxu1 }
 0x226   :  { %v399_v5 = vadd.f32 %v655_v4, %v571_v3  ;;  %v390_v6 = vpop.f32.mrb[1].mxu1 }
 0x227   :  { %v391_v7 = vadd.f32 %v571_v3, %v390_v6  ;;  %v656_v8 = vpop.f32.mrb[2].mxu1 }
 0x228   :  { %v402_v9 = vadd.f32 %v656_v8, %v571_v3  ;;  %v393_v10 = vpop.f32.mrb[3].mxu1  ;;  %v407_v12 = vmax.f32 %v399_v5, 0.0 }
 0x229   :  { %v394_v11 = vadd.f32 %v571_v3, %v393_v10  ;;  %v405_v14 = vmax.f32 %v391_v7, 0.0 }
 0x22a   :  { %v408_v13 = vmax.f32 %v402_v9, 0.0 }
 0x22b   :  { %v406_v15 = vmax.f32 %v394_v11, 0.0 }
 0x22c   :  { %v410_v16 = vpack.c.bf16 %v408_v13, %v407_v12 }
 0x22d   :  { %v409_v17 = vpack.c.bf16 %v406_v15, %v405_v14 }
 0x22f   :  { %673 = vmatprep.mubr.bf16.mxu0 %v409_v17 }
 0x230   :  { %674 = vmatmul.mubr.bf16.vlgmr.msra.gmra.mrb[8].mxu0 %v410_v16 }
 0x303   :  { %v675_v19 = vpop.f32.mrb[8].mxu0 }
 0x304   :  { %v525_v20 = vadd.f32 %v675_v19, %v580_v18  ;;  %v516_v21 = vpop.f32.mrb[9].mxu0 }
 0x305   :  { %v517_v22 = vadd.f32 %v580_v18, %v516_v21  ;;  %v676_v23 = vpop.f32.mrb[10].mxu0 }
 0x306   :  { %533 = vst [vmem:[#allocation10 + $0x10] sm:$0xff] %v525_v20  ;;  %v528_v24 = vadd.f32 %v676_v23, %v580_v18  ;;  %v519_v25 = vpop.f32.mrb[11].mxu0 }
 0x307   :  { %531 = vst [vmem:[#allocation10] sm:$0xff] %v517_v22  ;;  %v520_v26 = vadd.f32 %v580_v18, %v519_v25 }
 0x308   :  { %534 = vst [vmem:[#allocation10 + $0x18] sm:$0xff] %v528_v24 }
 0x309   :  { %532 = vst [vmem:[#allocation10 + $0x8] sm:$0xff] %v520_v26 }
 0x30a   :  { %819 = shalt.err (!%p816_p8)
}
 0x30b   :  { %s820_s10 = scalar_lea.hbm %s981_s7, 512 }
 0x30c   :  { %p821_p9 = scmp.ne.s32.totalorder %s981_s7, %s820_s10  ;;  %p824_p10 = scmp.lt.u32.totalorder %s820_s10, %s981_s7 }
 0x30e   :  { %p826_p11 = pnand %p824_p10, %p821_p9 }
 0x310   :  { %829 = shalt.err (!%p826_p11)
}
 0x311   :  { %s847_s18 = smov 128   ;;  %s848_s0 = smov 8  }
 0x312   :  { %546 = dma.vmem_to_hbm [thread:$0]  %s541_s30, 512, %s981_s7, [#allocation4], %s847_s18, %s847_s18, %s848_s0  }
 0x313   :  { %836 = dma.done.wait [#allocation4], 512  }
 0x314   :  { %837 = vsyncadd [#allocation4], 4294966784 }
 0x315   :  { %550 = vsyncpa [#allocation3], 1 }
 0x316   :  { %551 = vsyncpa [#allocation6], 1 }
 0x317   :  { %552 = vsyncpa [#allocation9], 1 }
 0x318   :  { %553 = vsyncpa [#allocation4], 1 }

// kernel: _forward.1
= control target key start
LH: loop header
LB: loop body
LE: loop exit
PB: predicated region body
PF: predicated region fallthrough
CT: control target
= control target key end

     0   :  { %12 = vsyncpa [#allocation3], 0  ;;  %s974_s0 = inlined_call_operand.hbm [shape: f32[32,256], index: 0, kind: input, shape index: {}]   ;;  %s975_s1 = inlined_call_operand.hbm [shape: bf16[256,128], index: 1, kind: input, shape index: {}]   ;;  %s976_s2 = inlined_call_operand.vmem [shape: f32[1,128], index: 2, kind: input, shape index: {}]   ;;  %s977_s3 = inlined_call_operand.hbm [shape: bf16[128,128], index: 3, kind: input, shape index: {}]   ;;  %s978_s4 = inlined_call_operand.vmem [shape: f32[1,128], index: 4, kind: input, shape index: {}]   ;;  %s979_s5 = inlined_call_operand.hbm [shape: bf16[128,128], index: 5, kind: input, shape index: {}]   ;;  %s980_s6 = inlined_call_operand.vmem [shape: f32[1,128], index: 6, kind: input, shape index: {}]   ;;  %s981_s7 = inlined_call_operand.hbm [shape: f32[32,128], index: 7, kind: output, shape index: {}]  }
   0x1   :  { %13 = vsyncpa [#allocation6], 0 }
   0x2   :  { %14 = vsyncpa [#allocation9], 0 }
   0x3   :  { %15 = vsyncpa [#allocation4], 0  ;;  %s838_s24 = smov [#allocation5]   ;;  %s720_s28 = scalar_lea.hbm %s975_s1, 2048 }
   0x4   :  { %s33_s25 = sshll.u32 %s838_s24, 4  ;;  %p721_p0 = scmp.ne.s32.totalorder %s975_s1, %s720_s28  ;;  %s34_s25 = int_to_ptr.vmem [resolvable:$true] %s33_s25 }
   0x5   :  { %p724_p1 = scmp.lt.u32.totalorder %s720_s28, %s975_s1 }
   0x7   :  { %p726_p2 = pnand %p724_p1, %p721_p0 }
   0x9   :  { %729 = shalt.err (!%p726_p2)
}
   0xa   :  { %s730_s10 = scalar_lea.vmem %s34_s25, 2048  ;;  %p735_p4 = scmp.lt.s32.totalorder %s34_s25, %s34_s25 }
   0xb   :  { %p731_p3 = scmp.ne.s32.totalorder %s34_s25, %s730_s10  ;;  %p736_p5 = scmp.lt.s32.totalorder %s730_s10, %s730_s10 }
   0xd   :  { %p737_p6 = por %p736_p5, %p735_p4 }
   0xf   :  { %p738_p7 = pnand %p737_p6, %p731_p3 }
  0x11   :  { %741 = shalt.err (!%p738_p7)
}
  0x12   :  { %s839_s11 = smov 64   ;;  %s840_s12 = smov 4  }
  0x13   :  { %39 = dma.hbm_to_vmem [thread:$0]  %s975_s1, 2048, %s34_s25, [#allocation6], %s839_s11, %s839_s11, %s840_s12  }
  0x14   :  { %s841_s15 = smov [#allocation2]   ;;  %s742_s19 = scalar_lea.hbm %s974_s0, 1024 }
  0x15   :  { %s21_s16 = sshll.u32 %s841_s15, 4  ;;  %p743_p8 = scmp.ne.s32.totalorder %s974_s0, %s742_s19  ;;  %s22_s16 = int_to_ptr.vmem [resolvable:$true] %s21_s16 }
  0x16   :  { %p746_p9 = scmp.lt.u32.totalorder %s742_s19, %s974_s0 }
  0x18   :  { %p748_p10 = pnand %p746_p9, %p743_p8 }
  0x1a   :  { %751 = shalt.err (!%p748_p10)
}
  0x1b   :  { %s752_s24 = scalar_lea.vmem %s22_s16, 1024  ;;  %p757_p12 = scmp.lt.s32.totalorder %s22_s16, %s22_s16 }
  0x1c   :  { %p753_p11 = scmp.ne.s32.totalorder %s22_s16, %s752_s24  ;;  %p758_p13 = scmp.lt.s32.totalorder %s752_s24, %s752_s24 }
  0x1e   :  { %p759_p0 = por %p758_p13, %p757_p12 }
  0x20   :  { %p760_p1 = pnand %p759_p0, %p753_p11 }
  0x22   :  { %763 = shalt.err (!%p760_p1)
}
  0x23   :  { %s842_s1 = smov 256   ;;  %s843_s25 = smov 16  }
  0x24   :  { %27 = dma.hbm_to_vmem [thread:$0]  %s974_s0, 1024, %s22_s16, [#allocation3], %s842_s1, %s842_s1, %s843_s25  }
  0x25   :  { %s844_s28 = smov [#allocation7]   ;;  %s845_s30 = smov [#allocation8]  }
  0x26   :  { %s47_s29 = sshll.u32 %s844_s28, 4  ;;  %s61_s8 = sshll.u32 %s845_s30, 4  ;;  %s48_s29 = int_to_ptr.vmem [resolvable:$true] %s47_s29  ;;  %s916_s8 = int_to_ptr.vmem [resolvable:$true] %s61_s8 }
  0x27   :  { %s764_s13 = scalar_lea.hbm %s977_s3, 1024 }
  0x28   :  { %p765_p2 = scmp.ne.s32.totalorder %s977_s3, %s764_s13  ;;  %p768_p3 = scmp.lt.u32.totalorder %s764_s13, %s977_s3 }
  0x2a   :  { %p770_p4 = pnand %p768_p3, %p765_p2 }
  0x2c   :  { %773 = shalt.err (!%p770_p4)
}
  0x2d   :  { %s774_s0 = scalar_lea.vmem %s48_s29, 1024  ;;  %p779_p6 = scmp.lt.s32.totalorder %s48_s29, %s48_s29 }
  0x2e   :  { %p775_p5 = scmp.ne.s32.totalorder %s48_s29, %s774_s0  ;;  %p780_p7 = scmp.lt.s32.totalorder %s774_s0, %s774_s0 }
  0x30   :  { %p781_p8 = por %p780_p7, %p779_p6 }
  0x32   :  { %p782_p9 = pnand %p781_p8, %p775_p5 }
  0x34   :  { %785 = shalt.err (!%p782_p9)
}
  0x35   :  { %53 = dma.hbm_to_vmem [thread:$0]  %s977_s3, 1024, %s48_s29, [#allocation6], %s839_s11, %s839_s11, %s840_s12  }
  0x36   :  { %s786_s22 = scalar_lea.hbm %s979_s5, 1024 }
  0x37   :  { %p787_p10 = scmp.ne.s32.totalorder %s979_s5, %s786_s22  ;;  %p790_p11 = scmp.lt.u32.totalorder %s786_s22, %s979_s5 }
  0x39   :  { %p792_p12 = pnand %p790_p11, %p787_p10 }
  0x3b   :  { %795 = shalt.err (!%p792_p12)
}
  0x3c   :  { %s796_s26 = scalar_lea.vmem %s916_s8, 1024  ;;  %p801_p0 = scmp.lt.s32.totalorder %s916_s8, %s916_s8 }
  0x3d   :  { %p797_p13 = scmp.ne.s32.totalorder %s916_s8, %s796_s26  ;;  %p802_p1 = scmp.lt.s32.totalorder %s796_s26, %s796_s26 }
  0x3f   :  { %p803_p2 = por %p802_p1, %p801_p0 }
  0x41   :  { %p804_p3 = pnand %p803_p2, %p797_p13 }
  0x43   :  { %807 = shalt.err (!%p804_p3)
}
  0x44   :  { %67 = dma.hbm_to_vmem [thread:$0]  %s979_s5, 1024, %s916_s8, [#allocation9], %s839_s11, %s839_s11, %s840_s12  }
  0x45   :  { %830 = dma.done.wait [#allocation3], 1024  }
  0x46   :  { %831 = vsyncadd [#allocation3], 4294966272 }
  0x47   :  { %832 = dma.done.wait [#allocation6], 3072  }
  0x48   :  { %833 = vsyncadd [#allocation6], 4294964224 }
  0x49   :  { %834 = dma.done.wait [#allocation9], 1024  }
  0x4a   :  { %835 = vsyncadd [#allocation9], 4294966272  ;;  %v688_v0 = vld [vmem:[#allocation5 + $0x40] sm:$0xff]   ;;  %v690_v2 = vld [vmem:[#allocation5 + $0x48] sm:$0xff]  }
  0x4b   :  { %v689_v1 = vld [vmem:[#allocation5] sm:$0xff]   ;;  %589 = vmatprep.subr.bf16.mxu0 %v688_v0  ;;  %v691_v3 = vld [vmem:[#allocation5 + $0x8] sm:$0xff]   ;;  %v692_v4 = vld [vmem:[#allocation5 + $0x50] sm:$0xff]  }
  0x4c   :  { %590 = vmatpush3.bf16.msra.mxu0 %v689_v1  ;;  %v693_v5 = vld [vmem:[#allocation5 + $0x10] sm:$0xff]   ;;  %v694_v6 = vld [vmem:[#allocation5 + $0x58] sm:$0xff]   ;;  %v696_v8 = vld [vmem:[#allocation5 + $0x60] sm:$0xff]  }
  0x4d   :  { %591 = vmatprep.subr.bf16.mxu0 %v690_v2  ;;  %v695_v7 = vld [vmem:[#allocation5 + $0x18] sm:$0xff]   ;;  %v697_v9 = vld [vmem:[#allocation5 + $0x20] sm:$0xff]   ;;  %v698_v10 = vld [vmem:[#allocation5 + $0x68] sm:$0xff]  }
  0x4e   :  { %v84_v11 = vld [vmem:[#allocation2 + $0x8] sm:$0xff]  ;;  %v86_v12 = vld [vmem:[#allocation2 + $0x18] sm:$0xff]  ;;  %v700_v15 = vld [vmem:[#allocation5 + $0x70] sm:$0xff]  }
  0x4f   :  { %v92_v13 = vpack.c.bf16 %v86_v12, %v84_v11  ;;  %v699_v14 = vld [vmem:[#allocation5 + $0x28] sm:$0xff]   ;;  %v704_v16 = vld [vmem:[#allocation7] sm:$0xff]   ;;  %v701_v18 = vld [vmem:[#allocation5 + $0x30] sm:$0xff]  }
  0x50   :  { %592 = vmatpush3.bf16.msra.mxu0 %v691_v3  ;;  %v705_v17 = vld [vmem:[#allocation7 + $0x8] sm:$0xff]   ;;  %637 = vmatprep.subr.bf16.mxu1 %v704_v16  ;;  %v706_v19 = vld [vmem:[#allocation7 + $0x10] sm:$0xff]   ;;  %v702_v20 = vld [vmem:[#allocation5 + $0x78] sm:$0xff]  }
  0x51   :  { %593 = vmatprep.subr.bf16.mxu0 %v692_v4  ;;  %262 = vmatprep.mubr.bf16.mxu0 %v92_v13  ;;  %v703_v21 = vld [vmem:[#allocation5 + $0x38] sm:$0xff]   ;;  %v83_v22 = vld [vmem:[#allocation2] sm:$0xff]  ;;  %v85_v23 = vld [vmem:[#allocation2 + $0x10] sm:$0xff] }
  0x52   :  { %638 = vmatpush3.bf16.msra.mxu1 %v704_v16  ;;  %v88_v24 = vld [vmem:[#allocation2 + $0x28] sm:$0xff]  ;;  %v90_v25 = vld [vmem:[#allocation2 + $0x38] sm:$0xff]  ;;  %v91_v26 = vpack.c.bf16 %v85_v23, %v83_v22  ;;  %v87_v28 = vld [vmem:[#allocation2 + $0x20] sm:$0xff] }
  0x53   :  { %639 = vmatprep.subr.bf16.mxu1 %v705_v17  ;;  %v94_v27 = vpack.c.bf16 %v90_v25, %v88_v24  ;;  %v89_v29 = vld [vmem:[#allocation2 + $0x30] sm:$0xff]  ;;  %v707_v31 = vld [vmem:[#allocation7 + $0x18] sm:$0xff]   ;;  %v708_v32 = vld [vmem:[#allocation7 + $0x20] sm:$0xff]  }
  0x54   :  { %594 = vmatpush3.bf16.msra.mxu0 %v693_v5  ;;  %v93_v30 = vpack.c.bf16 %v89_v29, %v87_v28  ;;  %v709_v33 = vld [vmem:[#allocation7 + $0x28] sm:$0xff]   ;;  %v710_v34 = vld [vmem:[#allocation7 + $0x30] sm:$0xff]   ;;  %v711_v35 = vld [vmem:[#allocation7 + $0x38] sm:$0xff]  }
  0x55   :  { %595 = vmatprep.subr.bf16.mxu0 %v694_v6  ;;  %v712_v36 = vld [vmem:[#allocation8] sm:$0xff]   ;;  %v713_v37 = vld [vmem:[#allocation8 + $0x8] sm:$0xff]   ;;  %v714_v38 = vld [vmem:[#allocation8 + $0x10] sm:$0xff]  }
  0x56   :  { %640 = vmatpush3.bf16.msra.mxu1 %v705_v17  ;;  %v715_v39 = vld [vmem:[#allocation8 + $0x18] sm:$0xff]   ;;  %v716_v40 = vld [vmem:[#allocation8 + $0x20] sm:$0xff]   ;;  %v717_v41 = vld [vmem:[#allocation8 + $0x28] sm:$0xff]  }
  0x57   :  { %641 = vmatprep.subr.bf16.mxu1 %v706_v19  ;;  %v554_v44 = vld [vmem:[%s976_s2] ss:$0 sm:$0xff]  ;;  %v718_v1 = vld [vmem:[#allocation8 + $0x30] sm:$0xff]   ;;  %v719_v2 = vld [vmem:[#allocation8 + $0x38] sm:$0xff]  }
  0x58   :  { %596 = vmatpush3.bf16.msra.mxu0 %v695_v7  ;;  %v571_v3 = vld [vmem:[%s978_s4] ss:$0 sm:$0xff]  ;;  %s846_s4 = smov [#allocation10]  }
  0x59   :  { %597 = vmatprep.subr.bf16.mxu0 %v696_v8  ;;  %s540_s30 = sshll.u32 %s846_s4, 4  ;;  %s541_s30 = int_to_ptr.vmem [resolvable:$true] %s540_s30 }
  0x5a   :  { %642 = vmatpush3.bf16.msra.mxu1 %v706_v19  ;;  %s808_s8 = scalar_lea.vmem %s541_s30, 512  ;;  %p813_p5 = scmp.lt.s32.totalorder %s541_s30, %s541_s30 }
  0x5b   :  { %643 = vmatprep.subr.bf16.mxu1 %v707_v31  ;;  %p809_p4 = scmp.ne.s32.totalorder %s541_s30, %s808_s8  ;;  %p814_p6 = scmp.lt.s32.totalorder %s808_s8, %s808_s8 }
  0x5c   :  { %598 = vmatpush3.bf16.msra.mxu0 %v697_v9 }
  0x5d   :  { %599 = vmatprep.subr.bf16.mxu0 %v698_v10  ;;  %p815_p7 = por %p814_p6, %p813_p5 }
  0x5e   :  { %644 = vmatpush3.bf16.msra.mxu1 %v707_v31 }
  0x5f   :  { %645 = vmatprep.subr.bf16.mxu1 %v708_v32  ;;  %p816_p8 = pnand %p815_p7, %p809_p4 }
  0x60   :  { %600 = vmatpush3.bf16.msra.mxu0 %v699_v14 }
  0x61   :  { %601 = vmatprep.subr.bf16.mxu0 %v700_v15 }
  0x62   :  { %646 = vmatpush3.bf16.msra.mxu1 %v708_v32 }
  0x63   :  { %647 = vmatprep.subr.bf16.mxu1 %v709_v33 }
  0x64   :  { %602 = vmatpush3.bf16.msra.mxu0 %v701_v18  ;;  %v580_v18 = vld [vmem:[%s980_s6] ss:$0 sm:$0xff] }
  0x65   :  { %603 = vmatprep.subr.bf16.mxu0 %v702_v20 }
  0x66   :  { %648 = vmatpush3.bf16.msra.mxu1 %v709_v33 }
  0x67   :  { %649 = vmatprep.subr.bf16.mxu1 %v710_v34 }
  0x68   :  { %604 = vmatpush3.bf16.msra.mxu0 %v703_v21 }
  0x69   :  { %657 = vmatprep.subr.bf16.mxu0 %v712_v36 }
  0x6a   :  { %650 = vmatpush3.bf16.msra.mxu1 %v710_v34 }
  0x6b   :  { %263 = vmatmul.mubr.bf16.vlgmr.msra.gmra.mrb[0].mxu0 %v91_v26  ;;  %651 = vmatprep.subr.bf16.mxu1 %v711_v35 }
  0x6c   :  { %270 = vmatprep.mubr.bf16.mxu0 %v94_v27  ;;  %658 = vmatpush3.bf16.msra.mxu0 %v712_v36 }
  0x6d   :  { %659 = vmatprep.subr.bf16.mxu0 %v713_v37 }
  0x6e   :  { %652 = vmatpush3.bf16.msra.mxu1 %v711_v35 }
  0x70   :  { %660 = vmatpush3.bf16.msra.mxu0 %v713_v37 }
  0x71   :  { %661 = vmatprep.subr.bf16.mxu0 %v714_v38 }
  0x73   :  { %271 = vmatmul.mubr.bf16.gmra.mrb[4].mxu0 %v93_v30 }
  0x74   :  { %662 = vmatpush3.bf16.msra.mxu0 %v714_v38 }
  0x75   :  { %663 = vmatprep.subr.bf16.mxu0 %v715_v39 }
  0x78   :  { %664 = vmatpush3.bf16.msra.mxu0 %v715_v39 }
  0x79   :  { %665 = vmatprep.subr.bf16.mxu0 %v716_v40 }
  0x7c   :  { %666 = vmatpush3.bf16.msra.mxu0 %v716_v40 }
  0x7d   :  { %667 = vmatprep.subr.bf16.mxu0 %v717_v41 }
  0x80   :  { %668 = vmatpush3.bf16.msra.mxu0 %v717_v41 }
  0x81   :  { %669 = vmatprep.subr.bf16.mxu0 %v718_v1 }
  0x84   :  { %670 = vmatpush3.bf16.msra.mxu0 %v718_v1 }
  0x85   :  { %671 = vmatprep.subr.bf16.mxu0 %v719_v2 }
  0x88   :  { %672 = vmatpush3.bf16.msra.mxu0 %v719_v2 }
 0x13e   :  { %v605_v42 = vpop.f32.mrb[0].mxu0 }
 0x13f   :  { %v606_v43 = vpop.f32.mrb[1].mxu0 }
 0x140   :  { %v607_v45 = vadd.f32 %v606_v43, %v605_v42  ;;  %v608_v46 = vpop.f32.mrb[2].mxu0 }
 0x141   :  { %v609_v47 = vpop.f32.mrb[3].mxu0 }
 0x142   :  { %v610_v48 = vadd.f32 %v609_v47, %v608_v46  ;;  %v265_v49 = vadd.f32 %v607_v45, %v554_v44 }
 0x144   :  { %v268_v50 = vadd.f32 %v610_v48, %v554_v44  ;;  %v279_v52 = vmax.f32 %v265_v49, 0.0 }
 0x146   :  { %v611_v51 = vpop.f32.mrb[4].mxu0  ;;  %v280_v53 = vmax.f32 %v268_v50, 0.0 }
 0x147   :  { %v612_v54 = vpop.f32.mrb[5].mxu0 }
 0x148   :  { %v613_v55 = vadd.f32 %v612_v54, %v611_v51  ;;  %v614_v56 = vpop.f32.mrb[6].mxu0  ;;  %v283_v57 = vpack.c.bf16 %v280_v53, %v279_v52 }
 0x149   :  { %v615_v58 = vpop.f32.mrb[7].mxu0 }
 0x14a   :  { %v273_v59 = vadd.f32 %v613_v55, %v554_v44  ;;  %v616_v60 = vadd.f32 %v615_v58, %v614_v56  ;;  %653 = vmatprep.mubr.bf16.mxu1 %v283_v57 }
 0x14c   :  { %v276_v61 = vadd.f32 %v616_v60, %v554_v44  ;;  %v281_v62 = vmax.f32 %v273_v59, 0.0 }
 0x14e   :  { %v282_v63 = vmax.f32 %v276_v61, 0.0 }
 0x150   :  { %v284_v0 = vpack.c.bf16 %v282_v63, %v281_v62 }
 0x152   :  { %654 = vmatmul.mubr.bf16.vlgmr.msra.gmra.mrb[0].mxu1 %v284_v0 }
 0x225   :  { %v655_v4 = vpop.f32.mrb[0].mxu1 }
 0x226   :  { %v399_v5 = vadd.f32 %v655_v4, %v571_v3  ;;  %v390_v6 = vpop.f32.mrb[1].mxu1 }
 0x227   :  { %v391_v7 = vadd.f32 %v571_v3, %v390_v6  ;;  %v656_v8 = vpop.f32.mrb[2].mxu1 }
 0x228   :  { %v402_v9 = vadd.f32 %v656_v8, %v571_v3  ;;  %v393_v10 = vpop.f32.mrb[3].mxu1  ;;  %v407_v12 = vmax.f32 %v399_v5, 0.0 }
 0x229   :  { %v394_v11 = vadd.f32 %v571_v3, %v393_v10  ;;  %v405_v14 = vmax.f32 %v391_v7, 0.0 }
 0x22a   :  { %v408_v13 = vmax.f32 %v402_v9, 0.0 }
 0x22b   :  { %v406_v15 = vmax.f32 %v394_v11, 0.0 }
 0x22c   :  { %v410_v16 = vpack.c.bf16 %v408_v13, %v407_v12 }
 0x22d   :  { %v409_v17 = vpack.c.bf16 %v406_v15, %v405_v14 }
 0x22f   :  { %673 = vmatprep.mubr.bf16.mxu0 %v409_v17 }
 0x230   :  { %674 = vmatmul.mubr.bf16.vlgmr.msra.gmra.mrb[8].mxu0 %v410_v16 }
 0x303   :  { %v675_v19 = vpop.f32.mrb[8].mxu0 }
 0x304   :  { %v525_v20 = vadd.f32 %v675_v19, %v580_v18  ;;  %v516_v21 = vpop.f32.mrb[9].mxu0 }
 0x305   :  { %v517_v22 = vadd.f32 %v580_v18, %v516_v21  ;;  %v676_v23 = vpop.f32.mrb[10].mxu0 }
 0x306   :  { %533 = vst [vmem:[#allocation10 + $0x10] sm:$0xff] %v525_v20  ;;  %v528_v24 = vadd.f32 %v676_v23, %v580_v18  ;;  %v519_v25 = vpop.f32.mrb[11].mxu0 }
 0x307   :  { %531 = vst [vmem:[#allocation10] sm:$0xff] %v517_v22  ;;  %v520_v26 = vadd.f32 %v580_v18, %v519_v25 }
 0x308   :  { %534 = vst [vmem:[#allocation10 + $0x18] sm:$0xff] %v528_v24 }
 0x309   :  { %532 = vst [vmem:[#allocation10 + $0x8] sm:$0xff] %v520_v26 }
 0x30a   :  { %819 = shalt.err (!%p816_p8)
}
 0x30b   :  { %s820_s10 = scalar_lea.hbm %s981_s7, 512 }
 0x30c   :  { %p821_p9 = scmp.ne.s32.totalorder %s981_s7, %s820_s10  ;;  %p824_p10 = scmp.lt.u32.totalorder %s820_s10, %s981_s7 }
 0x30e   :  { %p826_p11 = pnand %p824_p10, %p821_p9 }
 0x310   :  { %829 = shalt.err (!%p826_p11)
}
 0x311   :  { %s847_s18 = smov 128   ;;  %s848_s0 = smov 8  }
 0x312   :  { %546 = dma.vmem_to_hbm [thread:$0]  %s541_s30, 512, %s981_s7, [#allocation4], %s847_s18, %s847_s18, %s848_s0  }
 0x313   :  { %836 = dma.done.wait [#allocation4], 512  }
 0x314   :  { %837 = vsyncadd [#allocation4], 4294966784 }
 0x315   :  { %550 = vsyncpa [#allocation3], 1 }
 0x316   :  { %551 = vsyncpa [#allocation6], 1 }
 0x317   :  { %552 = vsyncpa [#allocation9], 1 }
 0x318   :  { %553 = vsyncpa [#allocation4], 1 }

</bundles_post_ra>
